<compile_context>
chip_gen: v7x
topology: tpu7x:2x2x1
jax: 0.10.0
libtpu: 0.0.40
codegen_flags: <defaults>
</compile_context>

<pallas_src>
import functools

import jax
import jax.numpy as jnp
from jax.experimental import pallas as pl
from jax.experimental.pallas import tpu as pltpu


# ----------------------------------------------------------------------------
# Kernel
# ----------------------------------------------------------------------------

def _layernorm_kernel(x_ref, a_ref, b_ref, o_ref, *, eps, n_features):
    """One (TM, D) row-tile of LayerNorm, matching the reference module:

        mean = x.mean(-1)
        std  = x.std(-1)            # torch default: unbiased (N-1 divisor)
        out  = a_2 * (x - mean) / (std + eps) + b_2
    """
    x = x_ref[...].astype(jnp.float32)                         # (TM, D)
    mean = jnp.mean(x, axis=-1, keepdims=True)                 # (TM, 1)
    xc = x - mean
    bessel = n_features - 1 if n_features > 1 else 1           # guard D == 1
    var = jnp.sum(xc * xc, axis=-1, keepdims=True) * (1.0 / bessel)
    std = jnp.sqrt(var)                                        # (TM, 1)
    # Per-row exact reciprocal: TM divides instead of TM*D (VALU relief).
    inv = 1.0 / (std + eps)                                    # (TM, 1)
    out = xc * inv * a_ref[...] + b_ref[...]                   # (1,D) broadcasts
    o_ref[...] = out.astype(o_ref.dtype)


# ----------------------------------------------------------------------------
# Wrapper
# ----------------------------------------------------------------------------

def _round_up(x, m):
    return (x + m - 1) // m * m


def pallas_layernorm(x, a_2, b_2, eps=1e-6, *,
                     io_tile_bytes=2 << 20,        # ~2 MiB streamed input / step
                     total_vmem_budget=24 << 20,   # working-set bound (<< 64 MiB v7x)
                     buffer_count=2):              # set 3 on v7x for deeper pipelining
    """LayerNorm over the last axis of `x` (any leading shape)."""
    orig_shape = x.shape
    D = orig_shape[-1]
    M = 1
    for s in orig_shape[:-1]:
        M *= s
    x2d = x.reshape(M, D)

    itemsize = int(jnp.dtype(x.dtype).itemsize)
    # Sublane packing: 8 rows for 32-bit, 16 for 16-bit, 32 for 8-bit dtypes.
    sub = max(8, 32 // itemsize)

    # Rows per tile from the streamed-input byte budget (dtype-aware) ...
    tm_io = max(sub, io_tile_bytes // max(1, D * itemsize))
    # ... bounded by the total VMEM working set:
    #   buffer_count x in-tile + 2 x out-tile (x.dtype) + ~3 f32 temporaries.
    per_row_bytes = D * ((buffer_count + 2) * itemsize + 3 * 4)
    tm_vmem = max(sub, total_vmem_budget // per_row_bytes)
    tm = min(tm_io, tm_vmem, _round_up(M, sub))
    tm = max(sub, (tm // sub) * sub)

    # No host-side padding: Pallas masks the partial last block's write-back.
    grid = (pl.cdiv(M, tm),)

    a2d = a_2.reshape(1, D).astype(jnp.float32)
    b2d = b_2.reshape(1, D).astype(jnp.float32)

    # Right-sized VMEM request: computed need + headroom, capped at 32 MiB
    # (half of v7x's 64 MiB/TC; well under v5e/v6e's 128 MiB).
    need = (tm * D * ((buffer_count + 2) * itemsize + 3 * 4)
            + 2 * 2 * 8 * D * 4)          # a_2/b_2: (1,D) pads to (8,D), x2 buffers
    vmem_limit = int(min(32 << 20, max(8 << 20, need + (4 << 20))))

    x_spec_kwargs = {}
    if buffer_count != 2:
        x_spec_kwargs["pipeline_mode"] = pl.Buffered(buffer_count)

    out = pl.pallas_call(
        functools.partial(_layernorm_kernel, eps=eps, n_features=D),
        out_shape=jax.ShapeDtypeStruct((M, D), x.dtype),
        grid_spec=pltpu.PrefetchScalarGridSpec(
            num_scalar_prefetch=0,
            grid=grid,
            in_specs=[
                pl.BlockSpec((tm, D), lambda i: (i, 0), **x_spec_kwargs),  # x tile
                pl.BlockSpec((1, D), lambda i: (0, 0)),                    # a_2 (resident)
                pl.BlockSpec((1, D), lambda i: (0, 0)),                    # b_2 (resident)
            ],
            out_specs=pl.BlockSpec((tm, D), lambda i: (i, 0)),
        ),
        compiler_params=pltpu.CompilerParams(
            # On v7x (2 TCs/chip) this axis could be pltpu.CORE_PARALLEL so both
            # TensorCores stream half the rows; "parallel" kept for portability.
            dimension_semantics=("parallel",),
            vmem_limit_bytes=vmem_limit,
        ),
        cost_estimate=pl.CostEstimate(
            flops=8 * M * D,
            transcendentals=M,                                  # one sqrt per row
            bytes_accessed=2 * M * D * itemsize + 2 * D * 4,    # dtype-aware
        ),
    )(x2d, a2d, b2d)

    return out.reshape(orig_shape)


# ----------------------------------------------------------------------------
# Reference (pure JAX) — exact semantics of the PyTorch module
# ----------------------------------------------------------------------------

def layernorm_ref(x, a_2, b_2, eps=1e-6):
    mean = jnp.mean(x, axis=-1, keepdims=True)
    std = jnp.std(x, axis=-1, keepdims=True, ddof=1)   # unbiased, like torch
    return a_2 * (x - mean) / (std + eps) + b_2


# ----------------------------------------------------------------------------
# Main
# ----------------------------------------------------------------------------

if __name__ == "__main__":
    eps = 1e-6
    key = jax.random.PRNGKey(0)
    kx, ka, kb, kx2 = jax.random.split(key, 4)

    # Primary check: small batch/seq, LLaMA-style hidden axis.
    B, S, D = 2, 8, 512
    x = jax.random.normal(kx, (B, S, D), dtype=jnp.float32)
    a_2 = 1.0 + 0.1 * jax.random.normal(ka, (D,), dtype=jnp.float32)
    b_2 = 0.1 * jax.random.normal(kb, (D,), dtype=jnp.float32)

    fwd = jax.jit(functools.partial(pallas_layernorm, eps=eps))
    out = jax.block_until_ready(fwd(x, a_2, b_2))
    ref = layernorm_ref(x, a_2, b_2, eps)

    assert out.shape == x.shape
    assert bool(jnp.all(jnp.isfinite(out)))
    assert bool(jnp.allclose(out, ref, rtol=1e-5, atol=1e-5)), (
        float(jnp.max(jnp.abs(out - ref))))

    # Secondary check: row count NOT a multiple of the tile (26 rows, tm=8)
    # to exercise the no-pad path where Pallas masks the partial last block.
    x2 = jax.random.normal(kx2, (2, 13, D), dtype=jnp.float32)
    fwd_partial = jax.jit(functools.partial(
        pallas_layernorm, eps=eps, io_tile_bytes=16 * 1024))
    out2 = jax.block_until_ready(fwd_partial(x2, a_2, b_2))
    ref2 = layernorm_ref(x2, a_2, b_2, eps)

    assert out2.shape == x2.shape
    assert bool(jnp.all(jnp.isfinite(out2)))
    assert bool(jnp.allclose(out2, ref2, rtol=1e-5, atol=1e-5)), (
        float(jnp.max(jnp.abs(out2 - ref2))))

    print("KERNEL_OK")
</pallas_src>

<mosaic_0001>
module attributes {stable_mosaic.version = 11 : i64} {
  func.func @_layernorm_kernel(%arg0: i32, %arg1: memref<16x512xf32, #tpu.memory_space<vmem>>, %arg2: memref<1x512xf32, #tpu.memory_space<vmem>>, %arg3: memref<1x512xf32, #tpu.memory_space<vmem>>, %arg4: memref<16x512xf32, #tpu.memory_space<vmem>>) attributes {dimension_semantics = [#tpu.dimension_semantics<parallel>], iteration_bounds = array<i64: 1>, scalar_prefetch = 0 : i64, scratch_operands = 0 : i64, tpu.core_type = #tpu.core_type<tc>, window_params = [{transform_indices = @transform_0, window_bounds = array<i64: 16, 512>}, {pipeline_mode = #tpu.pipeline_mode<synchronous>, transform_indices = @transform_1, window_bounds = array<i64: 1, 512>}, {pipeline_mode = #tpu.pipeline_mode<synchronous>, transform_indices = @transform_2, window_bounds = array<i64: 1, 512>}, {transform_indices = @transform_3, window_bounds = array<i64: 16, 512>}]} {
    %c0 = arith.constant 0 : index
    %c0_0 = arith.constant 0 : index
    %0 = vector.load %arg1[%c0, %c0_0] : memref<16x512xf32, #tpu.memory_space<vmem>>, vector<16x512xf32>
    %cst = arith.constant dense<0.000000e+00> : vector<16xf32>
    %1 = vector.multi_reduction <add>, %0, %cst [1] : vector<16x512xf32> to vector<16xf32>
    %2 = vector.shape_cast %1 : vector<16xf32> to vector<16x1xf32>
    %cst_1 = arith.constant 5.120000e+02 : f32
    %3 = vector.broadcast %cst_1 : f32 to vector<16x1xf32>
    %4 = arith.divf %2, %3 : vector<16x1xf32>
    %5 = vector.broadcast %4 : vector<16x1xf32> to vector<16x512xf32>
    %6 = arith.subf %0, %5 : vector<16x512xf32>
    %7 = arith.mulf %6, %6 : vector<16x512xf32>
    %cst_2 = arith.constant dense<0.000000e+00> : vector<16xf32>
    %8 = vector.multi_reduction <add>, %7, %cst_2 [1] : vector<16x512xf32> to vector<16xf32>
    %9 = vector.shape_cast %8 : vector<16xf32> to vector<16x1xf32>
    %cst_3 = arith.constant 0.00195694715 : f32
    %10 = vector.broadcast %cst_3 : f32 to vector<16x1xf32>
    %11 = arith.mulf %9, %10 : vector<16x1xf32>
    %12 = math.sqrt %11 : vector<16x1xf32>
    %cst_4 = arith.constant 9.99999997E-7 : f32
    %13 = vector.broadcast %cst_4 : f32 to vector<16x1xf32>
    %14 = arith.addf %12, %13 : vector<16x1xf32>
    %cst_5 = arith.constant 1.000000e+00 : f32
    %15 = vector.broadcast %cst_5 : f32 to vector<16x1xf32>
    %16 = arith.divf %15, %14 : vector<16x1xf32>
    %17 = vector.broadcast %16 : vector<16x1xf32> to vector<16x512xf32>
    %18 = arith.mulf %6, %17 : vector<16x512xf32>
    %c0_6 = arith.constant 0 : index
    %c0_7 = arith.constant 0 : index
    %19 = vector.load %arg2[%c0_6, %c0_7] : memref<1x512xf32, #tpu.memory_space<vmem>>, vector<1x512xf32>
    %20 = vector.broadcast %19 : vector<1x512xf32> to vector<16x512xf32>
    %21 = arith.mulf %18, %20 : vector<16x512xf32>
    %c0_8 = arith.constant 0 : index
    %c0_9 = arith.constant 0 : index
    %22 = vector.load %arg3[%c0_8, %c0_9] : memref<1x512xf32, #tpu.memory_space<vmem>>, vector<1x512xf32>
    %23 = vector.broadcast %22 : vector<1x512xf32> to vector<16x512xf32>
    %24 = arith.addf %21, %23 : vector<16x512xf32>
    %c0_10 = arith.constant 0 : index
    %c0_11 = arith.constant 0 : index
    %25 = vector.load %arg4[%c0_10, %c0_11] : memref<16x512xf32, #tpu.memory_space<vmem>>, vector<16x512xf32>
    tpu.vector_store %arg4[%c0_10, %c0_11], %24 {strides = array<i32>} : memref<16x512xf32, #tpu.memory_space<vmem>>, vector<16x512xf32>,
    return
  }
  func.func @transform_0(%arg0: i32) -> (i32, i32) {
    %c0_i32 = arith.constant 0 : i32
    %c0_i32_0 = arith.constant 0 : i32
    return %arg0, %c0_i32 : i32, i32
  }
  func.func @transform_1(%arg0: i32) -> (i32, i32) {
    %c0_i32 = arith.constant 0 : i32
    %c0_i32_0 = arith.constant 0 : i32
    %c0_i32_1 = arith.constant 0 : i32
    return %c0_i32, %c0_i32_0 : i32, i32
  }
  func.func @transform_2(%arg0: i32) -> (i32, i32) {
    %c0_i32 = arith.constant 0 : i32
    %c0_i32_0 = arith.constant 0 : i32
    %c0_i32_1 = arith.constant 0 : i32
    return %c0_i32, %c0_i32_0 : i32, i32
  }
  func.func @transform_3(%arg0: i32) -> (i32, i32) {
    %c0_i32 = arith.constant 0 : i32
    %c0_i32_0 = arith.constant 0 : i32
    return %arg0, %c0_i32 : i32, i32
  }
}

</mosaic_0001>

<bundles_post_ra>
// kernel: pallas_layernorm.1
= control target key start
LH: loop header
LB: loop body
LE: loop exit
PB: predicated region body
PF: predicated region fallthrough
CT: control target
= control target key end

     0   :  { %8 = vsyncpa [#allocation3], 0  ;;  %s346_s0 = inlined_call_operand.hbm [shape: f32[16,512], index: 0, kind: input, shape index: {}]   ;;  %s347_s1 = inlined_call_operand.vmem [shape: f32[1,512], index: 1, kind: input, shape index: {}]   ;;  %s348_s2 = inlined_call_operand.vmem [shape: f32[1,512], index: 2, kind: input, shape index: {}]   ;;  %s349_s3 = inlined_call_operand.hbm [shape: f32[16,512], index: 3, kind: output, shape index: {}]  }
   0x1   :  { %9 = vsyncpa [#allocation4], 0  ;;  %s251_s12 = smov [#allocation2]   ;;  %s203_s16 = scalar_lea.hbm %s346_s0, 1024 }
   0x2   :  { %s15_s13 = sshll.u32 %s251_s12, 4  ;;  %p204_p0 = scmp.ne.s32.totalorder %s346_s0, %s203_s16  ;;  %s16_s13 = int_to_ptr.vmem [resolvable:$true] %s15_s13 }
   0x3   :  { %p207_p1 = scmp.lt.u32.totalorder %s203_s16, %s346_s0 }
   0x5   :  { %p209_p2 = pnand %p207_p1, %p204_p0 }
   0x7   :  { %212 = shalt.err (!%p209_p2)
}
   0x8   :  { %s213_s21 = scalar_lea.vmem %s16_s13, 1024  ;;  %p218_p4 = scmp.lt.s32.totalorder %s16_s13, %s16_s13 }
   0x9   :  { %p214_p3 = scmp.ne.s32.totalorder %s16_s13, %s213_s21  ;;  %p219_p5 = scmp.lt.s32.totalorder %s213_s21, %s213_s21 }
   0xb   :  { %p220_p6 = por %p219_p5, %p218_p4 }
   0xd   :  { %p221_p7 = pnand %p220_p6, %p214_p3 }
   0xf   :  { %224 = shalt.err (!%p221_p7)
}
  0x10   :  { %s252_s22 = smov 512   ;;  %s253_s23 = smov 32  }
  0x11   :  { %21 = dma.hbm_to_vmem [thread:$0]  %s346_s0, 1024, %s16_s13, [#allocation3], %s252_s22, %s252_s22, %s253_s23  }
  0x12   :  { %247 = dma.done.wait [#allocation3], 1024  }
  0x13   :  { %248 = vsyncadd [#allocation3], 4294966272  ;;  %v29_v0 = vld [vmem:[#allocation2] sm:$0xff]  ;;  %v30_v1 = vld [vmem:[#allocation2 + $0x8] sm:$0xff]  ;;  %v108_v50 = vlaneseq }
  0x14   :  { %v31_v2 = vld [vmem:[#allocation2 + $0x10] sm:$0xff]  ;;  %v37_v3 = vadd.f32 %v30_v1, %v29_v0  ;;  %v33_v4 = vld [vmem:[#allocation2 + $0x20] sm:$0xff]  ;;  %v34_v5 = vld [vmem:[#allocation2 + $0x28] sm:$0xff] }
  0x15   :  { %v32_v6 = vld [vmem:[#allocation2 + $0x18] sm:$0xff]  ;;  %v35_v7 = vld [vmem:[#allocation2 + $0x30] sm:$0xff]  ;;  %v42_v8 = vadd.f32 %v34_v5, %v33_v4  ;;  %v109_v56 = vshrl.u32 %v108_v50, 7  ;;  %v106_v62 = vld [vmem:[%s347_s1] sm:$0xf]  ;;  %s254_s1 = smov [#allocation5]  }
  0x16   :  { %v38_v9 = vadd.f32 %v37_v3, %v31_v2  ;;  %v36_v10 = vld [vmem:[#allocation2 + $0x38] sm:$0xff]  ;;  %v136_v3 = vld [vmem:[%s348_s2] sm:$0xf]  ;;  %s179_s2 = sshll.u32 %s254_s1, 4  ;;  %s180_s2 = int_to_ptr.vmem [resolvable:$true] %s179_s2 }
  0x17   :  { %v43_v11 = vadd.f32 %v42_v8, %v35_v7  ;;  %v110_v58 = vsub.s32 0, %v109_v56  ;;  %v114_v59 = vsub.s32 1, %v109_v56  ;;  %v118_v60 = vsub.s32 2, %v109_v56  ;;  %s225_s29 = scalar_lea.vmem %s180_s2, 1024  ;;  %p230_p9 = scmp.lt.s32.totalorder %s180_s2, %s180_s2 }
  0x18   :  { %v39_v12 = vadd.f32 %v38_v9, %v32_v6  ;;  %v122_v61 = vsub.s32 3, %v109_v56  ;;  %p226_p8 = scmp.ne.s32.totalorder %s180_s2, %s225_s29  ;;  %p231_p10 = scmp.lt.s32.totalorder %s225_s29, %s225_s29 }
  0x19   :  { %v44_v13 = vadd.f32 %v43_v11, %v36_v10  ;;  %v111_v63 = vrot.slane %v106_v62, %v110_v58  ;;  %v141_v9 = vrot.slane %v136_v3, %v110_v58  ;;  %v149_v11 = vrot.slane %v136_v3, %v118_v60 }
  0x1a   :  { %40 = vadd.xlane.f32.xlu0 %v39_v12  ;;  %v153_v12 = vrot.slane %v136_v3, %v122_v61  ;;  %p232_p11 = por %p231_p10, %p230_p9 }
  0x1c   :  { %p233_p12 = pnand %p232_p11, %p226_p8 }
  0x1e   :  { %45 = vadd.xlane.f32.xlu0 %v44_v13 }
  0xa7   :  { %v41_v14 = vpop.xlane.xlu0 %40 }
  0xa8   :  { %v48_v15 = vmul.f32 0.001953125, %v41_v14 }
  0xaa   :  { %v290_v16 = vsub.f32 %v29_v0, %v48_v15  ;;  %v292_v17 = vsub.f32 %v30_v1, %v48_v15  ;;  %v294_v18 = vsub.f32 %v31_v2, %v48_v15  ;;  %v53_v20 = vsub.f32 %v32_v6, %v48_v15 }
  0xab   :  { %v46_v19 = vpop.xlane.xlu0 %45  ;;  %v115_v0 = vrot.slane %v106_v62, %v114_v59  ;;  %v119_v1 = vrot.slane %v106_v62, %v118_v60  ;;  %v123_v2 = vrot.slane %v106_v62, %v122_v61 }
  0xac   :  { %v49_v21 = vmul.f32 0.001953125, %v46_v19  ;;  %v58_v22 = vmul.f32 %v290_v16, %v290_v16  ;;  %v59_v23 = vmul.f32 %v292_v17, %v292_v17  ;;  %v60_v24 = vmul.f32 %v294_v18, %v294_v18 }
  0xad   :  { %v61_v29 = vmul.f32 %v53_v20, %v53_v20 }
  0xae   :  { %v302_v25 = vsub.f32 %v33_v4, %v49_v21  ;;  %v304_v26 = vsub.f32 %v34_v5, %v49_v21  ;;  %v66_v27 = vadd.f32 %v59_v23, %v58_v22  ;;  %v306_v28 = vsub.f32 %v35_v7, %v49_v21 }
  0xaf   :  { %v308_v31 = vsub.f32 %v36_v10, %v49_v21  ;;  %v145_v10 = vrot.slane %v136_v3, %v114_v59 }
  0xb0   :  { %v67_v30 = vadd.f32 %v66_v27, %v60_v24  ;;  %v62_v32 = vmul.f32 %v302_v25, %v302_v25  ;;  %v63_v33 = vmul.f32 %v304_v26, %v304_v26  ;;  %v64_v35 = vmul.f32 %v306_v28, %v306_v28 }
  0xb1   :  { %v65_v37 = vmul.f32 %v308_v31, %v308_v31 }
  0xb2   :  { %v68_v34 = vadd.f32 %v67_v30, %v61_v29  ;;  %v71_v36 = vadd.f32 %v63_v33, %v62_v32 }
  0xb4   :  { %69 = vadd.xlane.f32.xlu1 %v68_v34  ;;  %v72_v38 = vadd.f32 %v71_v36, %v64_v35 }
  0xb6   :  { %v73_v39 = vadd.f32 %v72_v38, %v65_v37 }
  0xb8   :  { %74 = vadd.xlane.f32.xlu1 %v73_v39 }
 0x141   :  { %v70_v40 = vpop.xlane.xlu1 %69 }
 0x142   :  { %v76_v41 = vmul.f32 0.0019569471, %v70_v40 }
 0x144   :  { %195 = vrsqrt.f32 %v76_v41  ;;  %vm80_vm0 = vcmp.eq.f32.partialorder %v76_v41, inf  ;;  %v83_v46 = vand.u32 2147483648, %v76_v41  ;;  %vm82_vm1 = vcmp.eq.f32.partialorder %v76_v41, 0.0 }
 0x145   :  { %v75_v42 = vpop.xlane.xlu1 %74 }
 0x146   :  { %v77_v43 = vmul.f32 0.0019569471, %v75_v42 }
 0x148   :  { %197 = vrsqrt.f32 %v77_v43  ;;  %vm87_vm2 = vcmp.eq.f32.partialorder %v77_v43, inf  ;;  %v90_v53 = vand.u32 2147483648, %v77_v43  ;;  %vm89_vm3 = vcmp.eq.f32.partialorder %v77_v43, 0.0 }
 0x14e   :  { %v196_v44 = vpop.eup %195 }
 0x14f   :  { %v79_v45 = vmul.f32 %v196_v44, %v76_v41 }
 0x151   :  { %v81_v47 = vsel %vm80_vm0, %v76_v41, %v79_v45 }
 0x152   :  { %v198_v48 = vpop.eup %197  ;;  %v84_v49 = vsel %vm82_vm1, %v83_v46, %v81_v47 }
 0x153   :  { %v92_v51 = vadd.f32 1e-06, %v84_v49  ;;  %v86_v52 = vmul.f32 %v198_v48, %v77_v43 }
 0x155   :  { %199 = vrcp.f32 %v92_v51  ;;  %v88_v54 = vsel %vm87_vm2, %v77_v43, %v86_v52 }
 0x156   :  { %v91_v55 = vsel %vm89_vm3, %v90_v53, %v88_v54 }
 0x157   :  { %v93_v57 = vadd.f32 1e-06, %v91_v55 }
 0x159   :  { %201 = vrcp.f32 %v93_v57 }
 0x15f   :  { %v200_v4 = vpop.eup %199 }
 0x160   :  { %v98_v5 = vmul.f32 %v200_v4, %v290_v16  ;;  %v99_v6 = vmul.f32 %v200_v4, %v292_v17  ;;  %v100_v7 = vmul.f32 %v200_v4, %v294_v18  ;;  %v101_v8 = vmul.f32 %v200_v4, %v53_v20 }
 0x162   :  { %v128_v13 = vmul.f32 %v111_v63, %v98_v5  ;;  %v129_v14 = vmul.f32 %v115_v0, %v99_v6  ;;  %v130_v15 = vmul.f32 %v119_v1, %v100_v7  ;;  %v131_v19 = vmul.f32 %v123_v2, %v101_v8 }
 0x163   :  { %v202_v21 = vpop.eup %201 }
 0x164   :  { %v102_v22 = vmul.f32 %v202_v21, %v302_v25  ;;  %v103_v23 = vmul.f32 %v202_v21, %v304_v26  ;;  %v104_v16 = vmul.f32 %v202_v21, %v306_v28  ;;  %v105_v17 = vmul.f32 %v202_v21, %v308_v31 }
 0x165   :  { %v158_v24 = vadd.f32 %v141_v9, %v128_v13  ;;  %v159_v18 = vadd.f32 %v145_v10, %v129_v14  ;;  %v160_v20 = vadd.f32 %v149_v11, %v130_v15  ;;  %v161_v27 = vadd.f32 %v153_v12, %v131_v19 }
 0x166   :  { %v132_v29 = vmul.f32 %v111_v63, %v102_v22  ;;  %v133_v30 = vmul.f32 %v115_v0, %v103_v23  ;;  %v134_v32 = vmul.f32 %v119_v1, %v104_v16  ;;  %v135_v33 = vmul.f32 %v123_v2, %v105_v17 }
 0x167   :  { %166 = vst [vmem:[#allocation5] sm:$0xff] %v158_v24  ;;  %167 = vst [vmem:[#allocation5 + $0x8] sm:$0xff] %v159_v18 }
 0x168   :  { %168 = vst [vmem:[#allocation5 + $0x10] sm:$0xff] %v160_v20  ;;  %169 = vst [vmem:[#allocation5 + $0x18] sm:$0xff] %v161_v27  ;;  %v162_v25 = vadd.f32 %v141_v9, %v132_v29  ;;  %v163_v26 = vadd.f32 %v145_v10, %v133_v30  ;;  %v164_v34 = vadd.f32 %v149_v11, %v134_v32 }
 0x169   :  { %v165_v28 = vadd.f32 %v153_v12, %v135_v33 }
 0x16a   :  { %170 = vst [vmem:[#allocation5 + $0x20] sm:$0xff] %v162_v25  ;;  %171 = vst [vmem:[#allocation5 + $0x28] sm:$0xff] %v163_v26 }
 0x16b   :  { %172 = vst [vmem:[#allocation5 + $0x30] sm:$0xff] %v164_v34  ;;  %173 = vst [vmem:[#allocation5 + $0x38] sm:$0xff] %v165_v28 }
 0x16c   :  { %236 = shalt.err (!%p233_p12)
}
 0x16d   :  { %s237_s5 = scalar_lea.hbm %s349_s3, 1024 }
 0x16e   :  { %p238_p13 = scmp.ne.s32.totalorder %s349_s3, %s237_s5  ;;  %p241_p0 = scmp.lt.u32.totalorder %s237_s5, %s349_s3 }
 0x170   :  { %p243_p1 = pnand %p241_p0, %p238_p13 }
 0x172   :  { %246 = shalt.err (!%p243_p1)
}
 0x173   :  { %185 = dma.vmem_to_hbm [thread:$0]  %s180_s2, 1024, %s349_s3, [#allocation4], %s252_s22, %s252_s22, %s253_s23  }
 0x174   :  { %249 = dma.done.wait [#allocation4], 1024  }
 0x175   :  { %250 = vsyncadd [#allocation4], 4294966272 }
 0x176   :  { %189 = vsyncpa [#allocation3], 1 }
 0x177   :  { %190 = vsyncpa [#allocation4], 1 }

</bundles_post_ra>
